<compile_context>
chip_gen: v7x
topology: tpu7x:2x2x1
jax: 0.10.0
libtpu: 0.0.40
codegen_flags: <defaults>
</compile_context>

<pallas_src>
import jax
import jax.numpy as jnp
from jax.experimental import pallas as pl
from jax.experimental.pallas import tpu as pltpu


def _mlp_kernel(x_ref, w1_ref, w2_ref, w3_ref, w4_ref,
                b1_ref, b2_ref, b3_ref, b4_ref, o_ref):
    """Fused 3-hidden-layer MLP + scalar head for one (TM, n_in) batch tile.

    Weights are in PyTorch (out, in) layout; the batch tile is transposed so
    every intermediate is (n_hidden, TM) with the batch on the lane axis.
    """
    # f32 transpose on the XLU (idle slot), then bf16 cast on the VPU (slack
    # under the x DMA).  xt: (n_in, TM) bf16.
    xt = x_ref[...].T.astype(jnp.bfloat16)
    # layer1 + relu: h = W1 @ x^T  -> (n_h1, TM), f32 accumulate.
    h = jnp.dot(w1_ref[...], xt, preferred_element_type=jnp.float32)
    h = jnp.maximum(h + b1_ref[...], 0.0)
    # layer2 (+ dropout: identity in eval) + relu
    h = jnp.dot(w2_ref[...], h.astype(jnp.bfloat16),
                preferred_element_type=jnp.float32)
    h = jnp.maximum(h + b2_ref[...], 0.0)
    # layer3 (+ dropout: identity in eval) + relu
    h = jnp.dot(w3_ref[...], h.astype(jnp.bfloat16),
                preferred_element_type=jnp.float32)
    h = jnp.maximum(h + b3_ref[...], 0.0)
    # output layer (1 unit): VPU multiply + sublane reduce -> lane-dense (1, TM).
    o = jnp.sum(h * w4_ref[...], axis=0, keepdims=True) + b4_ref[...]
    o_ref[...] = o.astype(o_ref.dtype)


def _round_up(n, m):
    return ((n + m - 1) // m) * m


def _pick_tile(batch, block_m):
    """Rows of the batch tile per grid step.

    Multi-tile path uses a multiple of 128 (lane-dense output blocks), capped
    at ~ceil(batch/2) so large batches always give both v7x TensorCores work;
    tiny batches collapse to a single sublane-aligned tile.
    """
    single = _round_up(batch, 8)                       # one step covers all rows
    multi = _round_up(max(int(block_m), 1), 128)       # user tile, lane aligned
    multi = min(multi, max(128, _round_up(pl.cdiv(batch, 2), 128)))
    return single if single <= multi else multi


def pathdnn_mlp_forward(x, params, *, block_m=8192):
    """x: (B, n_in) f32. params: PyTorch-layout weights (out, in) f32, biases (out,) f32."""
    B, n_in = x.shape
    bf16 = jnp.bfloat16

    # Tiny, VMEM-resident operands (one-time cast/reshape; negligible traffic).
    w1 = params["w1"].astype(bf16)                     # (n_h1, n_in)
    w2 = params["w2"].astype(bf16)                     # (n_h2, n_h1)
    w3 = params["w3"].astype(bf16)                     # (n_h3, n_h2)
    w4 = params["w4"].reshape(-1, 1).astype(jnp.float32)   # (n_h3, 1) f32 column
    b1 = params["b1"].reshape(-1, 1)
    b2 = params["b2"].reshape(-1, 1)
    b3 = params["b3"].reshape(-1, 1)
    b4 = params["b4"].reshape(1, 1)

    tm = _pick_tile(B, block_m)
    num_tiles = pl.cdiv(B, tm)

    # Weights / biases: constant index_map -> fetched once, stay in VMEM.
    resident = lambda a: pl.BlockSpec(a.shape, lambda i: (0,) * a.ndim)

    out = pl.pallas_call(
        _mlp_kernel,
        out_shape=jax.ShapeDtypeStruct((1, num_tiles * tm), jnp.float32),
        grid=(num_tiles,),
        in_specs=[pl.BlockSpec((tm, n_in), lambda i: (i, 0)),
                  resident(w1), resident(w2), resident(w3), resident(w4),
                  resident(b1), resident(b2), resident(b3), resident(b4)],
        out_specs=pl.BlockSpec((1, tm), lambda i: (0, i)),
        compiler_params=pltpu.CompilerParams(
            dimension_semantics=("parallel",)),
    )(x, w1, w2, w3, w4, b1, b2, b3, b4)

    # Lane-dense (1, num_tiles*tm) row -> (B, 1); ragged-tail garbage is dropped.
    return out[0, :B].reshape(B, 1).astype(x.dtype)


def init_params(key, n_in, n_h1, n_h2, n_h3):
    """Deterministic init mimicking PyTorch nn.Linear (U[-1/sqrt(fan_in), +]).

    Weights are stored in PyTorch layout (out_features, in_features); biases (out,).
    """
    dims = [(n_in, n_h1), (n_h1, n_h2), (n_h2, n_h3), (n_h3, 1)]
    params = {}
    for i, (fan_in, fan_out) in enumerate(dims, start=1):
        key, kw, kb = jax.random.split(key, 3)
        bound = 1.0 / jnp.sqrt(jnp.float32(fan_in))
        params[f"w{i}"] = jax.random.uniform(
            kw, (fan_out, fan_in), jnp.float32, -bound, bound)
        params[f"b{i}"] = jax.random.uniform(
            kb, (fan_out,), jnp.float32, -bound, bound)
    return params


def reference_forward(x, params):
    """Pure-JAX reference matching the kernel's precision (bf16 MXU operands,
    f32 accumulate/elementwise, f32 VPU reduction for the scalar head)."""
    bf16, f32 = jnp.bfloat16, jnp.float32
    h = jnp.dot(x.astype(bf16), params["w1"].astype(bf16).T,
                preferred_element_type=f32)
    h = jnp.maximum(h + params["b1"], 0.0)
    h = jnp.dot(h.astype(bf16), params["w2"].astype(bf16).T,
                preferred_element_type=f32)
    h = jnp.maximum(h + params["b2"], 0.0)
    h = jnp.dot(h.astype(bf16), params["w3"].astype(bf16).T,
                preferred_element_type=f32)
    h = jnp.maximum(h + params["b3"], 0.0)
    w4_row = params["w4"].reshape(1, -1).astype(f32)
    return jnp.sum(h * w4_row, axis=-1, keepdims=True) + params["b4"]


if __name__ == "__main__":
    # Small shapes consistent with the module's forward: x is (batch, n_in).
    batch, n_in, n_h1, n_h2, n_h3 = 8, 64, 32, 32, 32

    key = jax.random.PRNGKey(0)
    key, kx = jax.random.split(key)
    x = jax.random.normal(kx, (batch, n_in), jnp.float32)
    params = init_params(key, n_in, n_h1, n_h2, n_h3)

    out = jax.block_until_ready(pathdnn_mlp_forward(x, params))
    ref = reference_forward(x, params)
    assert out.shape == (batch, 1), out.shape
    assert jnp.allclose(out, ref, atol=2e-3, rtol=2e-3), \
        f"max abs err {jnp.max(jnp.abs(out - ref))}"

    # Exercise the multi-step batch grid + ragged tail block path.
    key, kx2 = jax.random.split(key)
    x2 = jax.random.normal(kx2, (300, n_in), jnp.float32)
    out2 = jax.block_until_ready(pathdnn_mlp_forward(x2, params, block_m=128))
    ref2 = reference_forward(x2, params)
    assert out2.shape == (300, 1), out2.shape
    assert jnp.allclose(out2, ref2, atol=2e-3, rtol=2e-3), \
        f"max abs err {jnp.max(jnp.abs(out2 - ref2))}"

    print("KERNEL_OK")
</pallas_src>

<mosaic_0001>
module attributes {stable_mosaic.version = 11 : i64} {
  func.func @_mlp_kernel(%arg0: i32, %arg1: memref<8x64xf32, #tpu.memory_space<vmem>>, %arg2: memref<32x64xbf16, #tpu.memory_space<vmem>>, %arg3: memref<32x32xbf16, #tpu.memory_space<vmem>>, %arg4: memref<32x32xbf16, #tpu.memory_space<vmem>>, %arg5: memref<32x1xf32, #tpu.memory_space<vmem>>, %arg6: memref<32x1xf32, #tpu.memory_space<vmem>>, %arg7: memref<32x1xf32, #tpu.memory_space<vmem>>, %arg8: memref<32x1xf32, #tpu.memory_space<vmem>>, %arg9: memref<1x1xf32, #tpu.memory_space<vmem>>, %arg10: memref<1x8xf32, #tpu.memory_space<vmem>>) attributes {dimension_semantics = [#tpu.dimension_semantics<parallel>], iteration_bounds = array<i64: 1>, scalar_prefetch = 0 : i64, scratch_operands = 0 : i64, tpu.core_type = #tpu.core_type<tc>, window_params = [{transform_indices = @transform_0, window_bounds = array<i64: 8, 64>}, {pipeline_mode = #tpu.pipeline_mode<synchronous>, transform_indices = @transform_1, window_bounds = array<i64: 32, 64>}, {pipeline_mode = #tpu.pipeline_mode<synchronous>, transform_indices = @transform_2, window_bounds = array<i64: 32, 32>}, {pipeline_mode = #tpu.pipeline_mode<synchronous>, transform_indices = @transform_3, window_bounds = array<i64: 32, 32>}, {pipeline_mode = #tpu.pipeline_mode<synchronous>, transform_indices = @transform_4, window_bounds = array<i64: 32, 1>}, {pipeline_mode = #tpu.pipeline_mode<synchronous>, transform_indices = @transform_5, window_bounds = array<i64: 32, 1>}, {pipeline_mode = #tpu.pipeline_mode<synchronous>, transform_indices = @transform_6, window_bounds = array<i64: 32, 1>}, {pipeline_mode = #tpu.pipeline_mode<synchronous>, transform_indices = @transform_7, window_bounds = array<i64: 32, 1>}, {pipeline_mode = #tpu.pipeline_mode<synchronous>, transform_indices = @transform_8, window_bounds = array<i64: 1, 1>}, {transform_indices = @transform_9, window_bounds = array<i64: 1, 8>}]} {
    %c0 = arith.constant 0 : index
    %c0_0 = arith.constant 0 : index
    %0 = vector.load %arg1[%c0, %c0_0] : memref<8x64xf32, #tpu.memory_space<vmem>>, vector<8x64xf32>
    %1 = tpu.transpose %0, [1, 0] : vector<8x64xf32> -> vector<64x8xf32>
    %2 = arith.truncf %1 : vector<64x8xf32> to vector<64x8xbf16>
    %c0_1 = arith.constant 0 : index
    %c0_2 = arith.constant 0 : index
    %3 = vector.load %arg2[%c0_1, %c0_2] : memref<32x64xbf16, #tpu.memory_space<vmem>>, vector<32x64xbf16>
    %cst = arith.constant dense<0.000000e+00> : vector<32x8xf32>
    %4 = tpu.matmul %3, %2, %cst {dimension_numbers = #tpu.dot_dimension_numbers<[1], [0], [0], [1], [0, 0, 1, 1], [], []>} : vector<32x64xbf16>, vector<64x8xbf16>, vector<32x8xf32> -> vector<32x8xf32>
    %c0_3 = arith.constant 0 : index
    %c0_4 = arith.constant 0 : index
    %5 = vector.load %arg6[%c0_3, %c0_4] : memref<32x1xf32, #tpu.memory_space<vmem>>, vector<32x1xf32>
    %6 = vector.broadcast %5 : vector<32x1xf32> to vector<32x8xf32>
    %7 = arith.addf %4, %6 : vector<32x8xf32>
    %cst_5 = arith.constant 0.000000e+00 : f32
    %8 = vector.broadcast %cst_5 : f32 to vector<32x8xf32>
    %9 = arith.maximumf %7, %8 : vector<32x8xf32>
    %c0_6 = arith.constant 0 : index
    %c0_7 = arith.constant 0 : index
    %10 = vector.load %arg3[%c0_6, %c0_7] : memref<32x32xbf16, #tpu.memory_space<vmem>>, vector<32x32xbf16>
    %11 = arith.truncf %9 : vector<32x8xf32> to vector<32x8xbf16>
    %cst_8 = arith.constant dense<0.000000e+00> : vector<32x8xf32>
    %12 = tpu.matmul %10, %11, %cst_8 {dimension_numbers = #tpu.dot_dimension_numbers<[1], [0], [0], [1], [0, 0, 1, 1], [], []>} : vector<32x32xbf16>, vector<32x8xbf16>, vector<32x8xf32> -> vector<32x8xf32>
    %c0_9 = arith.constant 0 : index
    %c0_10 = arith.constant 0 : index
    %13 = vector.load %arg7[%c0_9, %c0_10] : memref<32x1xf32, #tpu.memory_space<vmem>>, vector<32x1xf32>
    %14 = vector.broadcast %13 : vector<32x1xf32> to vector<32x8xf32>
    %15 = arith.addf %12, %14 : vector<32x8xf32>
    %cst_11 = arith.constant 0.000000e+00 : f32
    %16 = vector.broadcast %cst_11 : f32 to vector<32x8xf32>
    %17 = arith.maximumf %15, %16 : vector<32x8xf32>
    %c0_12 = arith.constant 0 : index
    %c0_13 = arith.constant 0 : index
    %18 = vector.load %arg4[%c0_12, %c0_13] : memref<32x32xbf16, #tpu.memory_space<vmem>>, vector<32x32xbf16>
    %19 = arith.truncf %17 : vector<32x8xf32> to vector<32x8xbf16>
    %cst_14 = arith.constant dense<0.000000e+00> : vector<32x8xf32>
    %20 = tpu.matmul %18, %19, %cst_14 {dimension_numbers = #tpu.dot_dimension_numbers<[1], [0], [0], [1], [0, 0, 1, 1], [], []>} : vector<32x32xbf16>, vector<32x8xbf16>, vector<32x8xf32> -> vector<32x8xf32>
    %c0_15 = arith.constant 0 : index
    %c0_16 = arith.constant 0 : index
    %21 = vector.load %arg8[%c0_15, %c0_16] : memref<32x1xf32, #tpu.memory_space<vmem>>, vector<32x1xf32>
    %22 = vector.broadcast %21 : vector<32x1xf32> to vector<32x8xf32>
    %23 = arith.addf %20, %22 : vector<32x8xf32>
    %cst_17 = arith.constant 0.000000e+00 : f32
    %24 = vector.broadcast %cst_17 : f32 to vector<32x8xf32>
    %25 = arith.maximumf %23, %24 : vector<32x8xf32>
    %c0_18 = arith.constant 0 : index
    %c0_19 = arith.constant 0 : index
    %26 = vector.load %arg5[%c0_18, %c0_19] : memref<32x1xf32, #tpu.memory_space<vmem>>, vector<32x1xf32>
    %27 = vector.broadcast %26 : vector<32x1xf32> to vector<32x8xf32>
    %28 = arith.mulf %25, %27 : vector<32x8xf32>
    %cst_20 = arith.constant dense<0.000000e+00> : vector<8xf32>
    %29 = vector.multi_reduction <add>, %28, %cst_20 [0] : vector<32x8xf32> to vector<8xf32>
    %30 = vector.shape_cast %29 : vector<8xf32> to vector<1x8xf32>
    %c0_21 = arith.constant 0 : index
    %c0_22 = arith.constant 0 : index
    %31 = vector.load %arg9[%c0_21, %c0_22] : memref<1x1xf32, #tpu.memory_space<vmem>>, vector<1x1xf32>
    %32 = vector.broadcast %31 : vector<1x1xf32> to vector<1x8xf32>
    %33 = arith.addf %30, %32 : vector<1x8xf32>
    %c0_23 = arith.constant 0 : index
    %c0_24 = arith.constant 0 : index
    %34 = vector.load %arg10[%c0_23, %c0_24] : memref<1x8xf32, #tpu.memory_space<vmem>>, vector<1x8xf32>
    tpu.vector_store %arg10[%c0_23, %c0_24], %33 {strides = array<i32>} : memref<1x8xf32, #tpu.memory_space<vmem>>, vector<1x8xf32>,
    return
  }
  func.func @transform_0(%arg0: i32) -> (i32, i32) {
    %c0_i32 = arith.constant 0 : i32
    %c0_i32_0 = arith.constant 0 : i32
    return %arg0, %c0_i32 : i32, i32
  }
  func.func @transform_1(%arg0: i32) -> (i32, i32) {
    %c0_i32 = arith.constant 0 : i32
    %c0_i32_0 = arith.constant 0 : i32
    %c0_i32_1 = arith.constant 0 : i32
    return %c0_i32, %c0_i32_0 : i32, i32
  }
  func.func @transform_2(%arg0: i32) -> (i32, i32) {
    %c0_i32 = arith.constant 0 : i32
    %c0_i32_0 = arith.constant 0 : i32
    %c0_i32_1 = arith.constant 0 : i32
    return %c0_i32, %c0_i32_0 : i32, i32
  }
  func.func @transform_3(%arg0: i32) -> (i32, i32) {
    %c0_i32 = arith.constant 0 : i32
    %c0_i32_0 = arith.constant 0 : i32
    %c0_i32_1 = arith.constant 0 : i32
    return %c0_i32, %c0_i32_0 : i32, i32
  }
  func.func @transform_4(%arg0: i32) -> (i32, i32) {
    %c0_i32 = arith.constant 0 : i32
    %c0_i32_0 = arith.constant 0 : i32
    %c0_i32_1 = arith.constant 0 : i32
    return %c0_i32, %c0_i32_0 : i32, i32
  }
  func.func @transform_5(%arg0: i32) -> (i32, i32) {
    %c0_i32 = arith.constant 0 : i32
    %c0_i32_0 = arith.constant 0 : i32
    %c0_i32_1 = arith.constant 0 : i32
    return %c0_i32, %c0_i32_0 : i32, i32
  }
  func.func @transform_6(%arg0: i32) -> (i32, i32) {
    %c0_i32 = arith.constant 0 : i32
    %c0_i32_0 = arith.constant 0 : i32
    %c0_i32_1 = arith.constant 0 : i32
    return %c0_i32, %c0_i32_0 : i32, i32
  }
  func.func @transform_7(%arg0: i32) -> (i32, i32) {
    %c0_i32 = arith.constant 0 : i32
    %c0_i32_0 = arith.constant 0 : i32
    %c0_i32_1 = arith.constant 0 : i32
    return %c0_i32, %c0_i32_0 : i32, i32
  }
  func.func @transform_8(%arg0: i32) -> (i32, i32) {
    %c0_i32 = arith.constant 0 : i32
    %c0_i32_0 = arith.constant 0 : i32
    %c0_i32_1 = arith.constant 0 : i32
    return %c0_i32, %c0_i32_0 : i32, i32
  }
  func.func @transform_9(%arg0: i32) -> (i32, i32) {
    %c0_i32 = arith.constant 0 : i32
    %c0_i32_0 = arith.constant 0 : i32
    return %c0_i32, %arg0 : i32, i32
  }
}

</mosaic_0001>

<bundles_post_ra>
// kernel: tpu_custom_call.1
= control target key start
LH: loop header
LB: loop body
LE: loop exit
PB: predicated region body
PF: predicated region fallthrough
CT: control target
= control target key end

     0   :  { %s670_s0 = inlined_call_operand.vmem [shape: f32[8,64], index: 0, kind: input, shape index: {}]   ;;  %s671_s1 = inlined_call_operand.vmem [shape: bf16[32,64], index: 1, kind: input, shape index: {}]   ;;  %s672_s2 = inlined_call_operand.vmem [shape: bf16[32,32], index: 2, kind: input, shape index: {}]   ;;  %s673_s3 = inlined_call_operand.vmem [shape: bf16[32,32], index: 3, kind: input, shape index: {}]   ;;  %s674_s4 = inlined_call_operand.vmem [shape: f32[32,1], index: 4, kind: input, shape index: {}]   ;;  %s675_s5 = inlined_call_operand.vmem [shape: f32[32,1], index: 5, kind: input, shape index: {}]   ;;  %s676_s6 = inlined_call_operand.vmem [shape: f32[32,1], index: 6, kind: input, shape index: {}]   ;;  %s677_s7 = inlined_call_operand.vmem [shape: f32[32,1], index: 7, kind: input, shape index: {}]   ;;  %s678_s8 = inlined_call_operand.<no memory space> [shape: f32[1,1], index: 8, kind: input, shape index: {}]   ;;  %s679_s9 = inlined_call_operand.hbm [shape: f32[1,8], index: 9, kind: output, shape index: {}]  }
   0x1   :  { %v14_v0 = vstv %s678_s8 }
   0x2   :  { %15 = vst [vmem:[#allocation2] sm:$0x1] %v14_v0 }
   0x3   :  { %v36_v1 = vld [vmem:[%s670_s0] sm:$0xff] }
   0x4   :  { %37 = vxpose.xlu0.b32.start.end [1/1] (short) (narrow) %v36_v1, 64 }
   0x5   :  { %16 = vsyncpa [#allocation4], 0  ;;  %v498_v2 = vld [vmem:[%s671_s1] sm:$0xff]   ;;  %vm111_vm0 = vcmask 523264   ;;  %v78_v3 = vld [vmem:[%s675_s5 + $0x8] sm:$0xff]  ;;  %v528_v4 = vmov 0  }
   0x6   :  { %473 = vmatprep.mubr.msk.bf16.mxu0 %vm111_vm0, %v498_v2  ;;  %497 = vset.pattern.permute.xlu1 %v528_v4  ;;  %v79_v5 = vld [vmem:[%s675_s5 + $0x10] sm:$0xff]  ;;  %v80_v6 = vld [vmem:[%s675_s5 + $0x18] sm:$0xff]  ;;  %v177_v7 = vld [vmem:[%s676_s6] sm:$0xff]  ;;  %vm211_vm1 = vcmask 261120   ;;  %vm398_vm2 = vcmask 64512   ;;  %vm423_vm3 = vcmask 57344  }
   0x7   :  { %88 = vperm.xlu1 %497, %v78_v3   ;;  %v178_v8 = vld [vmem:[%s676_s6 + $0x8] sm:$0xff]  ;;  %v179_v9 = vld [vmem:[%s676_s6 + $0x10] sm:$0xff]  ;;  %v180_v10 = vld [vmem:[%s676_s6 + $0x18] sm:$0xff] }
   0x8   :  { %v277_v11 = vld [vmem:[%s677_s7] sm:$0xff]  ;;  %v278_v12 = vld [vmem:[%s677_s7 + $0x8] sm:$0xff]  ;;  %v279_v14 = vld [vmem:[%s677_s7 + $0x10] sm:$0xff] }
   0x9   :  { %v77_v13 = vld [vmem:[%s675_s5] sm:$0xff]  ;;  %v280_v15 = vld [vmem:[%s677_s7 + $0x18] sm:$0xff]  ;;  %v371_v17 = vld [vmem:[%s674_s4 + $0x8] sm:$0xff] }
   0xa   :  { %v370_v16 = vld [vmem:[%s674_s4] sm:$0xff]  ;;  %v372_v18 = vld [vmem:[%s674_s4 + $0x10] sm:$0xff]  ;;  %v373_v19 = vld [vmem:[%s674_s4 + $0x18] sm:$0xff] }
   0xb   :  { %93 = vperm.xlu1 %497, %v79_v5   ;;  %v412_v20 = vld [vmem:[#allocation2] sm:$0x1]  ;;  %v499_v33 = vld [vmem:[%s671_s1 + $0x8] sm:$0xff]  }
   0xc   :  { %v500_v34 = vld [vmem:[%s672_s2] sm:$0xff]   ;;  %v501_v53 = vld [vmem:[%s672_s2 + $0x8] sm:$0xff]  }
   0xd   :  { %481 = vmatprep.mubr.msk.bf16.mxu1 %vm211_vm1, %v500_v34  ;;  %v502_v54 = vld [vmem:[%s673_s3] sm:$0xff]  }
   0xf   :  { %98 = vperm.xlu1 %497, %v80_v6  }
  0x13   :  { %183 = vperm.xlu1 %497, %v177_v7  }
  0x17   :  { %188 = vperm.xlu1 %497, %v178_v8  }
  0x1b   :  { %193 = vperm.xlu1 %497, %v179_v9   ;;  %v503_v9 = vld [vmem:[%s673_s3 + $0x8] sm:$0xff]   ;;  %s529_s3 = smov [#allocation3]  }
  0x1c   :  { %s431_s26 = sshll.u32 %s529_s3, 4  ;;  %s432_s26 = int_to_ptr.vmem [resolvable:$true] %s431_s26 }
  0x1d   :  { %s504_s27 = scalar_lea.vmem %s432_s26, 16  ;;  %s508_s28 = scalar_lea.vmem %s432_s26, 32 }
  0x1e   :  { %p505_p0 = scmp.ne.s32.totalorder %s432_s26, %s504_s27  ;;  %p509_p1 = scmp.lt.s32.totalorder %s432_s26, %s432_s26 }
  0x1f   :  { %198 = vperm.xlu1 %497, %v180_v10   ;;  %p510_p2 = scmp.lt.s32.totalorder %s508_s28, %s504_s27 }
  0x21   :  { %p511_p3 = por %p510_p2, %p509_p1 }
  0x23   :  { %283 = vperm.xlu1 %497, %v277_v11   ;;  %p512_p4 = pnand %p511_p3, %p505_p0 }
  0x27   :  { %288 = vperm.xlu1 %497, %v278_v12  }
  0x2b   :  { %293 = vperm.xlu1 %497, %v279_v14  }
  0x2d   :  { %496 = vset.pattern.permute.xlu0 %v528_v4 }
  0x2f   :  { %298 = vperm.xlu1 %497, %v280_v15  }
  0x33   :  { %376 = vperm.xlu1 %497, %v370_v16  }
  0x37   :  { %381 = vperm.xlu1 %497, %v371_v17  }
  0x3b   :  { %386 = vperm.xlu1 %497, %v372_v18  }
  0x3f   :  { %391 = vperm.xlu1 %497, %v373_v19  }
  0x43   :  { %415 = vperm.xlu1 %497, %v412_v20  }
  0x49   :  { %83 = vperm.xlu0 %496, %v77_v13  }
  0x84   :  { %v53_v21 = vpop.trf.xlu0 }
  0x86   :  { %v89_v35 = vpop.permute.xlu1 %88 }
  0x88   :  { %v54_v22 = vpop.trf.xlu0 }
  0x89   :  { %v69_v23 = vpack.c.bf16 %v54_v22, %v53_v21 }
  0x8a   :  { %v94_v36 = vpop.permute.xlu1 %93 }
  0x8b   :  { %465 = vmatprep.subr.bf16.mxu0 %v69_v23 }
  0x8c   :  { %466 = vmatpush3.bf16.msra.mxu0 %v69_v23  ;;  %v55_v24 = vpop.trf.xlu0 }
  0x8e   :  { %v99_v41 = vpop.permute.xlu1 %98 }
  0x90   :  { %v56_v25 = vpop.trf.xlu0 }
  0x91   :  { %v70_v26 = vpack.c.bf16 %v56_v25, %v55_v24 }
  0x92   :  { %v184_v55 = vpop.permute.xlu1 %183 }
  0x93   :  { %467 = vmatprep.subr.bf16.mxu0 %v70_v26 }
  0x94   :  { %468 = vmatpush3.bf16.msra.mxu0 %v70_v26  ;;  %v57_v27 = vpop.trf.xlu0 }
  0x96   :  { %v189_v56 = vpop.permute.xlu1 %188 }
  0x98   :  { %v58_v28 = vpop.trf.xlu0 }
  0x99   :  { %v71_v29 = vpack.c.bf16 %v58_v28, %v57_v27 }
  0x9a   :  { %v194_v57 = vpop.permute.xlu1 %193 }
  0x9b   :  { %469 = vmatprep.subr.bf16.mxu0 %v71_v29 }
  0x9c   :  { %470 = vmatpush3.bf16.msra.mxu0 %v71_v29  ;;  %v59_v30 = vpop.trf.xlu0 }
  0x9e   :  { %v199_v61 = vpop.permute.xlu1 %198 }
  0xa0   :  { %v60_v31 = vpop.trf.xlu0 }
  0xa1   :  { %v72_v32 = vpack.c.bf16 %v60_v31, %v59_v30 }
  0xa2   :  { %v284_v10 = vpop.permute.xlu1 %283 }
  0xa3   :  { %471 = vmatprep.subr.bf16.mxu0 %v72_v32 }
  0xa4   :  { %472 = vmatpush3.bf16.msra.mxu0 %v72_v32 }
  0xa6   :  { %v289_v11 = vpop.permute.xlu1 %288 }
  0xa7   :  { %474 = vmatmul.mubr.msk.bf16.vlgmr.msra.gmra.mrb[0].mxu0 %vm111_vm0, %v499_v33 }
  0xaa   :  { %v294_v12 = vpop.permute.xlu1 %293 }
  0xae   :  { %v299_v13 = vpop.permute.xlu1 %298 }
  0xb2   :  { %v377_v14 = vpop.permute.xlu1 %376 }
  0xb6   :  { %v382_v15 = vpop.permute.xlu1 %381 }
  0xba   :  { %v387_v21 = vpop.permute.xlu1 %386 }
  0xbe   :  { %v392_v32 = vpop.permute.xlu1 %391 }
  0xc8   :  { %v84_v37 = vpop.permute.xlu0 %83 }
 0x17a   :  { %v475_v38 = vpop.f32.mrb[0].mxu0 }
 0x17b   :  { %v161_v39 = vadd.f32 %v475_v38, %v94_v36  ;;  %v152_v40 = vpop.f32.mrb[1].mxu0 }
 0x17c   :  { %v153_v42 = vadd.f32 %v152_v40, %v84_v37  ;;  %v476_v43 = vpop.f32.mrb[2].mxu0  ;;  %v418_v40 = vlaneseq }
 0x17d   :  { %v164_v44 = vadd.f32 %v476_v43, %v99_v41  ;;  %v155_v45 = vpop.f32.mrb[3].mxu0  ;;  %v169_v47 = vmax.f32 %v161_v39, 0.0 }
 0x17e   :  { %v156_v46 = vadd.f32 %v155_v45, %v89_v35  ;;  %v167_v49 = vmax.f32 %v153_v42, 0.0  ;;  %v419_v43 = vshrl.u32 %v418_v40, 7 }
 0x17f   :  { %v170_v48 = vmax.f32 %v164_v44, 0.0 }
 0x180   :  { %v168_v50 = vmax.f32 %v156_v46, 0.0  ;;  %v420_v46 = vsub.s32 0, %v419_v43 }
 0x181   :  { %v176_v51 = vpack.c.bf16 %v170_v48, %v169_v47  ;;  %v416_v48 = vpop.permute.xlu1 %415 }
 0x182   :  { %v175_v52 = vpack.c.bf16 %v168_v50, %v167_v49  ;;  %v421_v50 = vrot.slane %v416_v48, %v420_v46 }
 0x184   :  { %477 = vmatprep.subr.bf16.mxu1 %v175_v52 }
 0x185   :  { %478 = vmatpush3.bf16.msra.mxu1 %v175_v52 }
 0x186   :  { %479 = vmatprep.subr.bf16.mxu1 %v176_v51 }
 0x189   :  { %480 = vmatpush3.bf16.msra.mxu1 %v176_v51 }
 0x18c   :  { %482 = vmatmul.mubr.msk.bf16.vlgmr.msra.gmra.mrb[0].mxu1 %vm211_vm1, %v501_v53 }
 0x18d   :  { %489 = vmatprep.mubr.msk.bf16.mxu1 %vm211_vm1, %v502_v54 }
 0x25f   :  { %v483_v58 = vpop.f32.mrb[0].mxu1 }
 0x260   :  { %v261_v59 = vadd.f32 %v483_v58, %v194_v57  ;;  %v252_v60 = vpop.f32.mrb[1].mxu1 }
 0x261   :  { %v253_v62 = vadd.f32 %v252_v60, %v184_v55  ;;  %v484_v63 = vpop.f32.mrb[2].mxu1 }
 0x262   :  { %v264_v0 = vadd.f32 %v484_v63, %v199_v61  ;;  %v255_v1 = vpop.f32.mrb[3].mxu1  ;;  %v269_v3 = vmax.f32 %v261_v59, 0.0 }
 0x263   :  { %v256_v2 = vadd.f32 %v255_v1, %v189_v56  ;;  %v267_v5 = vmax.f32 %v253_v62, 0.0 }
 0x264   :  { %v270_v4 = vmax.f32 %v264_v0, 0.0 }
 0x265   :  { %v268_v6 = vmax.f32 %v256_v2, 0.0 }
 0x266   :  { %v276_v7 = vpack.c.bf16 %v270_v4, %v269_v3 }
 0x267   :  { %v275_v8 = vpack.c.bf16 %v268_v6, %v267_v5 }
 0x269   :  { %485 = vmatprep.subr.bf16.mxu1 %v275_v8 }
 0x26a   :  { %486 = vmatpush3.bf16.msra.mxu1 %v275_v8 }
 0x26b   :  { %487 = vmatprep.subr.bf16.mxu1 %v276_v7 }
 0x26e   :  { %488 = vmatpush3.bf16.msra.mxu1 %v276_v7 }
 0x271   :  { %490 = vmatmul.mubr.msk.bf16.vlgmr.msra.gmra.mrb[4].mxu1 %vm211_vm1, %v503_v9 }
 0x344   :  { %v491_v16 = vpop.f32.mrb[4].mxu1 }
 0x345   :  { %v360_v17 = vadd.f32 %v491_v16, %v294_v12  ;;  %v351_v18 = vpop.f32.mrb[5].mxu1 }
 0x346   :  { %v352_v19 = vadd.f32 %v351_v18, %v284_v10  ;;  %v492_v20 = vpop.f32.mrb[6].mxu1 }
 0x347   :  { %v363_v22 = vadd.f32 %v492_v20, %v299_v13  ;;  %v354_v23 = vpop.f32.mrb[7].mxu1  ;;  %v368_v24 = vmax.f32 %v360_v17, 0.0 }
 0x348   :  { %v366_v25 = vmax.f32 %v352_v19, 0.0  ;;  %v355_v26 = vadd.f32 %v354_v23, %v289_v11 }
 0x349   :  { %v369_v28 = vmax.f32 %v363_v22, 0.0  ;;  %v396_v30 = vmul.f32 %v387_v21, %v368_v24 }
 0x34a   :  { %v394_v27 = vmul.f32 %v377_v14, %v366_v25  ;;  %v367_v29 = vmax.f32 %v355_v26, 0.0 }
 0x34b   :  { %v397_v34 = vmul.f32 %v392_v32, %v369_v28  ;;  %v402_v37 = vsel %vm398_vm2, %v396_v30, 0.0 }
 0x34c   :  { %v395_v31 = vmul.f32 %v382_v15, %v367_v29  ;;  %v399_v33 = vsel %vm398_vm2, %v394_v27, 0.0 }
 0x34d   :  { %v404_v39 = vsel %vm398_vm2, %v397_v34, 0.0 }
 0x34e   :  { %v400_v35 = vsel %vm398_vm2, %v395_v31, 0.0 }
 0x34f   :  { %v401_v36 = vadd.f32 %v400_v35, %v399_v33 }
 0x351   :  { %v403_v38 = vadd.f32 %v402_v37, %v401_v36 }
 0x353   :  { %v405_v41 = vadd.f32 %v404_v39, %v403_v38 }
 0x355   :  { %v406_v42 = vrot.slane %v405_v41, 4 }
 0x357   :  { %v407_v44 = vadd.f32 %v406_v42, %v405_v41 }
 0x359   :  { %v408_v45 = vrot.slane %v407_v44, 2 }
 0x35b   :  { %v409_v47 = vadd.f32 %v408_v45, %v407_v44 }
 0x35d   :  { %v410_v49 = vrot.slane %v409_v47, 1 }
 0x35f   :  { %v411_v51 = vadd.f32 %v410_v49, %v409_v47 }
 0x361   :  { %v422_v52 = vadd.f32 %v421_v50, %v411_v51 }
 0x363   :  { %424 = vst.msk [vmem:[#allocation3] sm:$0x1] %vm423_vm3, %v422_v52 }
 0x364   :  { %515 = shalt.err (!%p512_p4)
}
 0x365   :  { %s516_s10 = scalar_lea.hbm %s679_s9, 16 }
 0x366   :  { %p517_p5 = scmp.ne.s32.totalorder %s679_s9, %s516_s10  ;;  %p520_p6 = scmp.lt.u32.totalorder %s516_s10, %s679_s9 }
 0x368   :  { %p522_p7 = pnand %p520_p6, %p517_p5 }
 0x36a   :  { %525 = shalt.err (!%p522_p7)
}
 0x36b   :  { %434 = dma.vmem_to_hbm [thread:$0]  %s432_s26, 16, %s679_s9, [#allocation4]  }
 0x36c   :  { %526 = dma.done.wait [#allocation4], 16  }
 0x36d   :  { %527 = vsyncadd [#allocation4], 4294967280 }
 0x36e   :  { %438 = vsyncpa [#allocation4], 1 }

</bundles_post_ra>
